<compile_context>
chip_gen: v6e
topology: v6e:2x2x1
jax: 0.10.0
libtpu: 0.0.40
codegen_flags: <defaults>
</compile_context>

<pallas_src>
import functools

import jax
import jax.numpy as jnp
from jax.experimental import pallas as pl
from jax.experimental.pallas import tpu as pltpu


def _round_up(x, m):
    return (x + m - 1) // m * m


# ----------------------------------------------------------------------------
# Kernel
# ----------------------------------------------------------------------------
def decoder_kernel(style_ref,   # (TB, style_dim) f32     streamed
                   class_ref,   # (TB, class_dim) f32     streamed
                   ws_ref,      # (style_dim, 128) bf16   VMEM-resident
                   bs_ref,      # (1, 128) f32            VMEM-resident
                   wc_ref,      # (class_dim, 128) bf16   VMEM-resident
                   bc_ref,      # (1, 128) f32            VMEM-resident
                   w1_ref,      # (128, 256) bf16         VMEM-resident
                   b1_ref,      # (1, 256) f32            VMEM-resident
                   w2_ref,      # (8, 256) f32 (fc_2 weight, row-replicated)
                   b2_ref,      # (1,) f32                SMEM scalar
                   o_ref,       # (1, TB) f32             lane-dense output
                   *, compute_dtype):
    def leaky(v):
        return jnp.where(v > 0, v, v * 0.2)

    cd = compute_dtype

    # Style / class projections: two small bf16 MXU matmuls, f32 accumulation.
    s = jnp.dot(style_ref[...].astype(jnp.bfloat16), ws_ref[...],
                preferred_element_type=jnp.float32)
    c = jnp.dot(class_ref[...].astype(jnp.bfloat16), wc_ref[...],
                preferred_element_type=jnp.float32)
    s = leaky((s + bs_ref[...]).astype(cd))
    c = leaky((c + bc_ref[...]).astype(cd))
    x = (s + c).astype(jnp.bfloat16)                       # (TB, 128)

    # fc_1: (TB,128) @ (128,256) on the MXU.
    h = jnp.dot(x, w1_ref[...], preferred_element_type=jnp.float32)
    h = leaky((h + b1_ref[...]).astype(cd)).astype(jnp.float32)   # (TB, 256)

    # fc_2 as an NT matmul (both operands contracted on their last, 256-wide
    # dim) so the per-row results come out of the MXU with the batch on the
    # LANE axis: (8, 256) x (TB, 256) -> (8, TB).  All 8 rows are identical
    # (w2 is row-replicated); take row 0, add bias, sigmoid on dense vregs.
    y = jax.lax.dot_general(w2_ref[...], h,
                            dimension_numbers=(((1,), (1,)), ((), ())),
                            preferred_element_type=jnp.float32)   # (8, TB)
    y = y[0:1, :] + b2_ref[0]
    o_ref[...] = jax.nn.sigmoid(y)                         # dense (1, TB) store


# ----------------------------------------------------------------------------
# One-time weight packing (hoisted out of the per-call wrapper)
# ----------------------------------------------------------------------------
def prepare_params(params):
    ws, bs, wc, bc, w1, b1, w2, b2 = params
    w2_rows = jnp.tile(jnp.reshape(w2, (1, -1)), (8, 1)).astype(jnp.float32)
    return (ws.astype(jnp.bfloat16), bs.astype(jnp.float32),
            wc.astype(jnp.bfloat16), bc.astype(jnp.float32),
            w1.astype(jnp.bfloat16), b1.astype(jnp.float32),
            w2_rows, jnp.reshape(b2, (1,)).astype(jnp.float32))


# ----------------------------------------------------------------------------
# Wrapper
# ----------------------------------------------------------------------------
def decoder_forward(style, clazz, prepared, *, block_b=2048,
                    compute_dtype=jnp.float32):
    """style: (B, style_dim), clazz: (B, class_dim) -> (B, 1) float32.

    `prepared` comes from prepare_params().  compute_dtype=jnp.bfloat16 is a
    valid option on v6e/v7x (bf16 VALU); keep f32 (default) on v5e.
    """
    ws, bs, wc, bc, w1, b1, w2_rows, b2 = prepared
    B, style_dim = style.shape
    class_dim = clazz.shape[1]

    # Batch tile: as large as possible (per-grid-step overhead ~0.35 us), a
    # multiple of 128, but split so the grid has >= 2 steps once B >= 256 so
    # the "parallel" axis can be sharded across v7x's two TensorCores.
    tb_cap = _round_up(B, 128)
    if B >= 256:
        tb_cap = _round_up(-(-B // 2), 128)
    tb = min(block_b, tb_cap)
    b_pad = _round_up(B, tb)
    if b_pad != B:
        style = jnp.pad(style, ((0, b_pad - B), (0, 0)))
        clazz = jnp.pad(clazz, ((0, b_pad - B), (0, 0)))
    grid = (b_pad // tb,)

    def resident(arr):   # constant block index -> stays VMEM-resident across steps
        return pl.BlockSpec(arr.shape, lambda i: (0, 0))

    out = pl.pallas_call(
        functools.partial(decoder_kernel, compute_dtype=compute_dtype),
        out_shape=jax.ShapeDtypeStruct((1, b_pad), jnp.float32),
        grid=grid,
        in_specs=[
            pl.BlockSpec((tb, style_dim), lambda i: (i, 0)),   # streamed
            pl.BlockSpec((tb, class_dim), lambda i: (i, 0)),   # streamed
            resident(ws), resident(bs), resident(wc), resident(bc),
            resident(w1), resident(b1), resident(w2_rows),
            pl.BlockSpec(memory_space=pltpu.MemorySpace.SMEM),  # b2 scalar
        ],
        out_specs=pl.BlockSpec((1, tb), lambda i: (0, i)),      # lane-dense
        compiler_params=pltpu.CompilerParams(
            dimension_semantics=("parallel",),
            vmem_limit_bytes=32 * 1024 * 1024),
    )(style, clazz, ws, bs, wc, bc, w1, b1, w2_rows, b2)

    return out[0, :B].reshape(B, 1)


# ----------------------------------------------------------------------------
# Parameters / references
# ----------------------------------------------------------------------------
def init_params(key, style_dim, class_dim):
    """Deterministic synthetic parameters, already transposed to (in, out)."""
    ks = jax.random.split(key, 8)

    def lin(kw, kb, fan_in, fan_out):
        w = jax.random.normal(kw, (fan_in, fan_out), jnp.float32) * 0.1
        b = jax.random.normal(kb, (1, fan_out), jnp.float32) * 0.1
        return w, b

    ws, bs = lin(ks[0], ks[1], style_dim, 128)   # style_input
    wc, bc = lin(ks[2], ks[3], class_dim, 128)   # class_input
    w1, b1 = lin(ks[4], ks[5], 128, 256)         # fc_1
    w2, b2 = lin(ks[6], ks[7], 256, 1)           # fc_2
    return (ws, bs, wc, bc, w1, b1, w2, b2)


def decoder_ref_bf16(style, clazz, params, compute_dtype=jnp.float32):
    """Plain-JAX reference mirroring the kernel's exact dtype path."""
    ws, bs, wc, bc, w1, b1, w2, b2 = params
    cd = compute_dtype
    leaky = lambda v: jnp.where(v > 0, v, v * 0.2)
    bf = lambda a: a.astype(jnp.bfloat16)
    s = jnp.dot(bf(style), bf(ws), preferred_element_type=jnp.float32) + bs
    c = jnp.dot(bf(clazz), bf(wc), preferred_element_type=jnp.float32) + bc
    x = (leaky(s.astype(cd)) + leaky(c.astype(cd))).astype(jnp.bfloat16)
    h = jnp.dot(x, bf(w1), preferred_element_type=jnp.float32) + b1
    h = leaky(h.astype(cd)).astype(jnp.float32)
    return jax.nn.sigmoid(h @ w2 + b2)           # final layer in f32 (as kernel)


def decoder_ref_f32(style, clazz, params):
    """Full-f32 reference matching the PyTorch forward exactly."""
    ws, bs, wc, bc, w1, b1, w2, b2 = params
    leaky = lambda v: jnp.where(v > 0, v, 0.2 * v)
    s = leaky(style @ ws + bs)
    c = leaky(clazz @ wc + bc)
    x = s + c
    h = leaky(x @ w1 + b1)
    return jax.nn.sigmoid(h @ w2 + b2)


# ----------------------------------------------------------------------------
# Demo / correctness check
# ----------------------------------------------------------------------------
if __name__ == "__main__":
    style_dim, class_dim, batch = 16, 32, 256
    key = jax.random.PRNGKey(0)
    k_s, k_c, k_p = jax.random.split(key, 3)

    style = jax.random.normal(k_s, (batch, style_dim), jnp.float32)
    clazz = jax.random.normal(k_c, (batch, class_dim), jnp.float32)
    params = init_params(k_p, style_dim, class_dim)
    prepared = prepare_params(params)            # one-time weight packing

    out = decoder_forward(style, clazz, prepared)
    out = jax.block_until_ready(out)
    assert out.shape == (batch, 1), out.shape

    # Tight check vs. a reference that follows the same dtype path.
    ref_bf = decoder_ref_bf16(style, clazz, params)
    assert jnp.allclose(out, ref_bf, atol=5e-4, rtol=1e-3), (
        float(jnp.max(jnp.abs(out - ref_bf))))

    # Loose check vs. the exact f32 PyTorch-equivalent forward.
    ref_f32 = decoder_ref_f32(style, clazz, params)
    assert jnp.allclose(out, ref_f32, atol=5e-2), (
        float(jnp.max(jnp.abs(out - ref_f32))))

    print("KERNEL_OK")
</pallas_src>

<mosaic_0001>
module attributes {stable_mosaic.version = 11 : i64} {
  func.func @decoder_kernel(%arg0: i32, %arg1: memref<128x16xf32, #tpu.memory_space<vmem>>, %arg2: memref<128x32xf32, #tpu.memory_space<vmem>>, %arg3: memref<16x128xbf16, #tpu.memory_space<vmem>>, %arg4: memref<1x128xf32, #tpu.memory_space<vmem>>, %arg5: memref<32x128xbf16, #tpu.memory_space<vmem>>, %arg6: memref<1x128xf32, #tpu.memory_space<vmem>>, %arg7: memref<128x256xbf16, #tpu.memory_space<vmem>>, %arg8: memref<1x256xf32, #tpu.memory_space<vmem>>, %arg9: memref<8x256xf32, #tpu.memory_space<vmem>>, %arg10: memref<1xf32, #tpu.memory_space<smem>>, %arg11: memref<1x128xf32, #tpu.memory_space<vmem>>) attributes {dimension_semantics = [#tpu.dimension_semantics<parallel>], iteration_bounds = array<i64: 2>, scalar_prefetch = 0 : i64, scratch_operands = 0 : i64, tpu.core_type = #tpu.core_type<tc>, window_params = [{transform_indices = @transform_0, window_bounds = array<i64: 128, 16>}, {transform_indices = @transform_1, window_bounds = array<i64: 128, 32>}, {pipeline_mode = #tpu.pipeline_mode<synchronous>, transform_indices = @transform_2, window_bounds = array<i64: 16, 128>}, {pipeline_mode = #tpu.pipeline_mode<synchronous>, transform_indices = @transform_3, window_bounds = array<i64: 1, 128>}, {pipeline_mode = #tpu.pipeline_mode<synchronous>, transform_indices = @transform_4, window_bounds = array<i64: 32, 128>}, {pipeline_mode = #tpu.pipeline_mode<synchronous>, transform_indices = @transform_5, window_bounds = array<i64: 1, 128>}, {pipeline_mode = #tpu.pipeline_mode<synchronous>, transform_indices = @transform_6, window_bounds = array<i64: 128, 256>}, {pipeline_mode = #tpu.pipeline_mode<synchronous>, transform_indices = @transform_7, window_bounds = array<i64: 1, 256>}, {pipeline_mode = #tpu.pipeline_mode<synchronous>, transform_indices = @transform_8, window_bounds = array<i64: 8, 256>}, {transform_indices = @transform_9, window_bounds = array<i64: 1>}, {transform_indices = @transform_10, window_bounds = array<i64: 1, 128>}]} {
    %c0 = arith.constant 0 : index
    %c0_0 = arith.constant 0 : index
    %0 = vector.load %arg1[%c0, %c0_0] : memref<128x16xf32, #tpu.memory_space<vmem>>, vector<128x16xf32>
    %1 = arith.truncf %0 : vector<128x16xf32> to vector<128x16xbf16>
    %c0_1 = arith.constant 0 : index
    %c0_2 = arith.constant 0 : index
    %2 = vector.load %arg3[%c0_1, %c0_2] : memref<16x128xbf16, #tpu.memory_space<vmem>>, vector<16x128xbf16>
    %cst = arith.constant dense<0.000000e+00> : vector<128x128xf32>
    %3 = tpu.matmul %1, %2, %cst {dimension_numbers = #tpu.dot_dimension_numbers<[1], [0], [0], [1], [0, 0, 1, 1], [], []>} : vector<128x16xbf16>, vector<16x128xbf16>, vector<128x128xf32> -> vector<128x128xf32>
    %c0_3 = arith.constant 0 : index
    %c0_4 = arith.constant 0 : index
    %4 = vector.load %arg2[%c0_3, %c0_4] : memref<128x32xf32, #tpu.memory_space<vmem>>, vector<128x32xf32>
    %5 = arith.truncf %4 : vector<128x32xf32> to vector<128x32xbf16>
    %c0_5 = arith.constant 0 : index
    %c0_6 = arith.constant 0 : index
    %6 = vector.load %arg5[%c0_5, %c0_6] : memref<32x128xbf16, #tpu.memory_space<vmem>>, vector<32x128xbf16>
    %cst_7 = arith.constant dense<0.000000e+00> : vector<128x128xf32>
    %7 = tpu.matmul %5, %6, %cst_7 {dimension_numbers = #tpu.dot_dimension_numbers<[1], [0], [0], [1], [0, 0, 1, 1], [], []>} : vector<128x32xbf16>, vector<32x128xbf16>, vector<128x128xf32> -> vector<128x128xf32>
    %c0_8 = arith.constant 0 : index
    %c0_9 = arith.constant 0 : index
    %8 = vector.load %arg4[%c0_8, %c0_9] : memref<1x128xf32, #tpu.memory_space<vmem>>, vector<1x128xf32>
    %9 = vector.broadcast %8 : vector<1x128xf32> to vector<128x128xf32>
    %10 = arith.addf %3, %9 : vector<128x128xf32>
    %cst_10 = arith.constant 0.000000e+00 : f32
    %11 = vector.broadcast %cst_10 : f32 to vector<128x128xf32>
    %12 = arith.cmpf ogt, %10, %11 : vector<128x128xf32>
    %cst_11 = arith.constant 2.000000e-01 : f32
    %13 = vector.broadcast %cst_11 : f32 to vector<128x128xf32>
    %14 = arith.mulf %10, %13 : vector<128x128xf32>
    %15 = arith.select %12, %10, %14 : vector<128x128xi1>, vector<128x128xf32>
    %c0_12 = arith.constant 0 : index
    %c0_13 = arith.constant 0 : index
    %16 = vector.load %arg6[%c0_12, %c0_13] : memref<1x128xf32, #tpu.memory_space<vmem>>, vector<1x128xf32>
    %17 = vector.broadcast %16 : vector<1x128xf32> to vector<128x128xf32>
    %18 = arith.addf %7, %17 : vector<128x128xf32>
    %cst_14 = arith.constant 0.000000e+00 : f32
    %19 = vector.broadcast %cst_14 : f32 to vector<128x128xf32>
    %20 = arith.cmpf ogt, %18, %19 : vector<128x128xf32>
    %cst_15 = arith.constant 2.000000e-01 : f32
    %21 = vector.broadcast %cst_15 : f32 to vector<128x128xf32>
    %22 = arith.mulf %18, %21 : vector<128x128xf32>
    %23 = arith.select %20, %18, %22 : vector<128x128xi1>, vector<128x128xf32>
    %24 = arith.addf %15, %23 : vector<128x128xf32>
    %25 = arith.truncf %24 : vector<128x128xf32> to vector<128x128xbf16>
    %c0_16 = arith.constant 0 : index
    %c0_17 = arith.constant 0 : index
    %26 = vector.load %arg7[%c0_16, %c0_17] : memref<128x256xbf16, #tpu.memory_space<vmem>>, vector<128x256xbf16>
    %cst_18 = arith.constant dense<0.000000e+00> : vector<128x256xf32>
    %27 = tpu.matmul %25, %26, %cst_18 {dimension_numbers = #tpu.dot_dimension_numbers<[1], [0], [0], [1], [0, 0, 1, 1], [], []>} : vector<128x128xbf16>, vector<128x256xbf16>, vector<128x256xf32> -> vector<128x256xf32>
    %c0_19 = arith.constant 0 : index
    %c0_20 = arith.constant 0 : index
    %28 = vector.load %arg8[%c0_19, %c0_20] : memref<1x256xf32, #tpu.memory_space<vmem>>, vector<1x256xf32>
    %29 = vector.broadcast %28 : vector<1x256xf32> to vector<128x256xf32>
    %30 = arith.addf %27, %29 : vector<128x256xf32>
    %cst_21 = arith.constant 0.000000e+00 : f32
    %31 = vector.broadcast %cst_21 : f32 to vector<128x256xf32>
    %32 = arith.cmpf ogt, %30, %31 : vector<128x256xf32>
    %cst_22 = arith.constant 2.000000e-01 : f32
    %33 = vector.broadcast %cst_22 : f32 to vector<128x256xf32>
    %34 = arith.mulf %30, %33 : vector<128x256xf32>
    %35 = arith.select %32, %30, %34 : vector<128x256xi1>, vector<128x256xf32>
    %c0_23 = arith.constant 0 : index
    %c0_24 = arith.constant 0 : index
    %36 = vector.load %arg9[%c0_23, %c0_24] : memref<8x256xf32, #tpu.memory_space<vmem>>, vector<8x256xf32>
    %cst_25 = arith.constant dense<0.000000e+00> : vector<8x128xf32>
    %37 = tpu.matmul %36, %35, %cst_25 {dimension_numbers = #tpu.dot_dimension_numbers<[1], [1], [0], [0], [0, 0, 1, 0], [], []>} : vector<8x256xf32>, vector<128x256xf32>, vector<8x128xf32> -> vector<8x128xf32>
    %38 = vector.extract_strided_slice %37 {offsets = [0, 0], sizes = [1, 128], strides = [1, 1]} : vector<8x128xf32> to vector<1x128xf32>
    %c0_26 = arith.constant 0 : index
    %39 = memref.load %arg10[%c0_26] : memref<1xf32, #tpu.memory_space<smem>>
    %40 = vector.broadcast %39 : f32 to vector<1x128xf32>
    %41 = arith.addf %38, %40 : vector<1x128xf32>
    %42 = arith.negf %41 : vector<1x128xf32>
    %43 = math.exp %42 : vector<1x128xf32>
    %cst_27 = arith.constant 1.000000e+00 : f32
    %44 = vector.broadcast %cst_27 : f32 to vector<1x128xf32>
    %45 = arith.addf %44, %43 : vector<1x128xf32>
    %46 = arith.divf %44, %45 : vector<1x128xf32>
    %c0_28 = arith.constant 0 : index
    %c0_29 = arith.constant 0 : index
    %47 = vector.load %arg11[%c0_28, %c0_29] : memref<1x128xf32, #tpu.memory_space<vmem>>, vector<1x128xf32>
    tpu.vector_store %arg11[%c0_28, %c0_29], %46 {strides = array<i32>} : memref<1x128xf32, #tpu.memory_space<vmem>>, vector<1x128xf32>,
    return
  }
  func.func @transform_0(%arg0: i32) -> (i32, i32) {
    %c0_i32 = arith.constant 0 : i32
    %c0_i32_0 = arith.constant 0 : i32
    return %arg0, %c0_i32 : i32, i32
  }
  func.func @transform_1(%arg0: i32) -> (i32, i32) {
    %c0_i32 = arith.constant 0 : i32
    %c0_i32_0 = arith.constant 0 : i32
    return %arg0, %c0_i32 : i32, i32
  }
  func.func @transform_2(%arg0: i32) -> (i32, i32) {
    %c0_i32 = arith.constant 0 : i32
    %c0_i32_0 = arith.constant 0 : i32
    %c0_i32_1 = arith.constant 0 : i32
    return %c0_i32, %c0_i32_0 : i32, i32
  }
  func.func @transform_3(%arg0: i32) -> (i32, i32) {
    %c0_i32 = arith.constant 0 : i32
    %c0_i32_0 = arith.constant 0 : i32
    %c0_i32_1 = arith.constant 0 : i32
    return %c0_i32, %c0_i32_0 : i32, i32
  }
  func.func @transform_4(%arg0: i32) -> (i32, i32) {
    %c0_i32 = arith.constant 0 : i32
    %c0_i32_0 = arith.constant 0 : i32
    %c0_i32_1 = arith.constant 0 : i32
    return %c0_i32, %c0_i32_0 : i32, i32
  }
  func.func @transform_5(%arg0: i32) -> (i32, i32) {
    %c0_i32 = arith.constant 0 : i32
    %c0_i32_0 = arith.constant 0 : i32
    %c0_i32_1 = arith.constant 0 : i32
    return %c0_i32, %c0_i32_0 : i32, i32
  }
  func.func @transform_6(%arg0: i32) -> (i32, i32) {
    %c0_i32 = arith.constant 0 : i32
    %c0_i32_0 = arith.constant 0 : i32
    %c0_i32_1 = arith.constant 0 : i32
    return %c0_i32, %c0_i32_0 : i32, i32
  }
  func.func @transform_7(%arg0: i32) -> (i32, i32) {
    %c0_i32 = arith.constant 0 : i32
    %c0_i32_0 = arith.constant 0 : i32
    %c0_i32_1 = arith.constant 0 : i32
    return %c0_i32, %c0_i32_0 : i32, i32
  }
  func.func @transform_8(%arg0: i32) -> (i32, i32) {
    %c0_i32 = arith.constant 0 : i32
    %c0_i32_0 = arith.constant 0 : i32
    %c0_i32_1 = arith.constant 0 : i32
    return %c0_i32, %c0_i32_0 : i32, i32
  }
  func.func @transform_9(%arg0: i32) -> i32 {
    %c0_i32 = arith.constant 0 : i32
    %c0_i32_0 = arith.constant 0 : i32
    return %c0_i32 : i32
  }
  func.func @transform_10(%arg0: i32) -> (i32, i32) {
    %c0_i32 = arith.constant 0 : i32
    %c0_i32_0 = arith.constant 0 : i32
    return %c0_i32, %arg0 : i32, i32
  }
}

</mosaic_0001>

<bundles_post_ra>
// kernel: tpu_custom_call.1
= control target key start
LH: loop header
LB: loop body
LE: loop exit
PB: predicated region body
PF: predicated region fallthrough
CT: control target
= control target key end

     0   :  { %s1977_s0 = inlined_call_operand.vmem [shape: f32[256,16], index: 0, kind: input, shape index: {}]   ;;  %s1978_s1 = inlined_call_operand.vmem [shape: f32[256,32], index: 1, kind: input, shape index: {}]   ;;  %s1979_s2 = inlined_call_operand.vmem [shape: bf16[16,128], index: 2, kind: input, shape index: {}]   ;;  %s1980_s3 = inlined_call_operand.vmem [shape: f32[1,128], index: 3, kind: input, shape index: {}]   ;;  %s1981_s4 = inlined_call_operand.vmem [shape: bf16[32,128], index: 4, kind: input, shape index: {}]   ;;  %s1982_s5 = inlined_call_operand.vmem [shape: f32[1,128], index: 5, kind: input, shape index: {}]   ;;  %s1983_s6 = inlined_call_operand.vmem [shape: bf16[128,256], index: 6, kind: input, shape index: {}]   ;;  %s1984_s7 = inlined_call_operand.vmem [shape: f32[1,256], index: 7, kind: input, shape index: {}]   ;;  %s1985_s8 = inlined_call_operand.vmem [shape: f32[8,256], index: 8, kind: input, shape index: {}]   ;;  %s1986_s9 = inlined_call_operand.<no memory space> [shape: f32[1], index: 9, kind: input, shape index: {}]   ;;  %s1987_s10 = inlined_call_operand.hbm [shape: f32[1,256], index: 10, kind: output, shape index: {}]  }
   0x1   :  { %15 = sst [smem:[#allocation2]] %s1986_s9 }
   0x2   :  { %16 = vsyncpa [#allocation4], 0 }
   0x3   :  { %18 = vsyncpa [#allocation4 + $0x1], 0  ;;  %s1611_s15 = smov 0   ;;  %s1613_s16 = smov 0  }
   0x4   :  { %s1615_s17 = smov 0   ;;  %s1617_s18 = smov 0  }
   0x5 LB: > { %s1311_s9 = sadd.s32 4294967295, %s1549_s18   ;;  %s1312_s19 = sadd.s32 4294967294, %s1549_s18   ;;  %s1549_s18 = sphi %s1617_s18, %s1993_s18   ;;  %s1545_s17 = sphi %s1615_s17, %s1992_s17   ;;  %s1541_s16 = sphi %s1613_s16, %s1991_s16   ;;  %s1537_s15 = sphi %s1611_s15, %s1990_s15  }
   0x6   : > { %s1634_s20 = sadd.s32 1, %s1549_s18   ;;  %s251_s21 = sadd.s32 1, %s1545_s17 }
   0x7   : > { %s248_s22 = ssub.s32 %s1549_s18, %s1634_s20  ;;  %p261_p0 = scmp.ne.s32.totalorder %s1545_s17, %s1541_s16 }
   0x8   : > { %p249_p1 = scmp.eq.s32.totalorder %s248_s22, 0  ;;  %p262_p2 = scmp.eq.s32.totalorder %s1311_s9, 1 }
   0x9   : > { %p267_p3 = scmp.ne.s32.totalorder %s1541_s16, %s1537_s15  ;;  %p268_p4 = scmp.eq.s32.totalorder %s1312_s19, 1 }
   0xa   : > { %s1644_s23 = scalar_select %p249_p1, %s1545_s17, %s251_s21  }
   0xb   : > { %p1646_p5 = por %p262_p2, %p261_p0  ;;  %p1650_p6 = por %p268_p4, %p267_p3 }
   0xc   : > { %p1315_p7 = scmp.ge.s32.totalorder %s1549_s18, 1  ;;  %p328_p8 = scmp.lt.s32.totalorder %s1549_s18, 3 }
   0xe   : > { %p329_p9 = pnand %p1315_p7, %p328_p8 }
   0xf   : > { %s1659_s28 = sshll.u32 (!%p329_p9), %s1311_s9, 4  ;;  %s1222_s21 = sld [smem:[#allocation2]] (!%p329_p9) }
  0x10   : > { %332 = sbr.rel (%p329_p9) target bundleno = 802 (0x322), region = 60  ;;  %p371_p10 = scmp.lt.s32.totalorder (!%p329_p9), %s1659_s28, 31 }
  0x11   : > { %s368_s22 = sand.u32 (!%p329_p9), 1, %s1541_s16   ;;  %s1552_s14 = smov (!%p329_p9), [#allocation3]  }
  0x12   : > { %s369_s27 = scalar_lea.vmem (!%p329_p9), [#allocation3], %s368_s22  ;;  %s1493_s9 = sshll.u32 (!%p329_p9), %s1552_s14, 4  ;;  %s1494_s9 = int_to_ptr.vmem [resolvable:$false] %s1493_s9 }
  0x13   : > { %s1245_s29 = sshll.u32 (!%p329_p9), %s369_s27, 4  ;;  %s1246_s29 = int_to_ptr.vmem [resolvable:$true] %s1245_s29 }
  0x14   : > { %p1496_p0 = scmp.lt.s32.totalorder (!%p329_p9), %s1246_s29, %s1494_s9 }
  0x15   : > { %v1458_v0 = vld [vmem:[%s1981_s4 + $0x8] sm:$0xff]   ;;  %v1459_v1 = vld [vmem:[%s1979_s2] sm:$0xff]   ;;  %s372_s13 = scalar_select %p371_p10, %s1659_s28, 31  ;;  %v1463_v3 = vld [vmem:[%s1983_s6 + $0x74] ss:$8 sps:$4 sm:$0xff]   ;;  %vm450_vm0 = vcmask 130048  }
  0x16   : > { %1398 = vmatprep.subr.bf16.mxu1 %v1458_v0  ;;  %v1460_v2 = vld [vmem:[%s1981_s4] sm:$0xff]   ;;  %1380 = vmatprep.subr.bf16.mxu0 %v1459_v1  ;;  %v1461_v4 = vld [vmem:[%s1983_s6 + $0x70] ss:$8 sps:$4 sm:$0xff]   ;;  %vm639_vm1 = vcmask 261120   ;;  %v1469_v25 = vld [vmem:[%s1983_s6 + $0x54] ss:$8 sps:$4 sm:$0xff]  }
  0x17   : > { %1399 = vmatpush3.bf16.msra.mxu1 %v1458_v0  ;;  %1381 = vmatpush3.bf16.msra.mxu0 %v1459_v1  ;;  %s1317_s19 = sshll.u32 %s372_s13, 3  ;;  %v1466_v12 = vld [vmem:[%s1983_s6 + $0x64] ss:$8 sps:$4 sm:$0xff]   ;;  %v1464_v24 = vld [vmem:[%s1983_s6 + $0x60] ss:$8 sps:$4 sm:$0xff]   ;;  %s1233_s13 = scalar_lea.sflag [#allocation4], %s368_s22 }
  0x18   : > { %1400 = vmatprep.subr.bf16.mxu1 %v1460_v2  ;;  %s1675_s26 = scalar_lea.vmem %s1977_s0, %s1317_s19  ;;  %s1680_s30 = scalar_lea.vmem %s1978_s1, %s1317_s19  ;;  %941 = vmatprep.subr.bf16.mxu0 %v1463_v3  ;;  %v1467_v38 = vld [vmem:[%s1983_s6 + $0x50] ss:$8 sps:$4 sm:$0xff]   ;;  %v1472_v41 = vld [vmem:[%s1983_s6 + $0x44] ss:$8 sps:$4 sm:$0xff]   ;;  %v1470_v47 = vld [vmem:[%s1983_s6 + $0x40] ss:$8 sps:$4 sm:$0xff]  }
  0x19   : > { %v383_v5 = vld [vmem:[%s1675_s26] sm:$0xff]  ;;  %v384_v6 = vld [vmem:[%s1675_s26 + $0x8] sm:$0xff]  ;;  %v385_v10 = vld [vmem:[%s1675_s26 + $0x10] sm:$0xff]  ;;  %v1551_v3 = vmov 0   ;;  %s1495_s19 = scalar_lea.vmem %s1494_s9, 32 }
  0x1a   : > { %v409_v7 = vld [vmem:[%s1680_s30] sm:$0xff]  ;;  %v399_v8 = vpack.c.bf16 %v384_v6, %v383_v5  ;;  %v410_v9 = vld [vmem:[%s1680_s30 + $0x8] sm:$0xff]  ;;  %v386_v11 = vld [vmem:[%s1675_s26 + $0x18] sm:$0xff] }
  0x1b   : > { %1401 = vmatpush3.bf16.msra.mxu1 %v1460_v2  ;;  %v425_v13 = vpack.c.bf16 %v410_v9, %v409_v7  ;;  %v400_v14 = vpack.c.bf16 %v386_v11, %v385_v10  ;;  %v411_v15 = vld [vmem:[%s1680_s30 + $0x10] sm:$0xff]  ;;  %v412_v16 = vld [vmem:[%s1680_s30 + $0x18] sm:$0xff]  ;;  %v387_v17 = vld [vmem:[%s1675_s26 + $0x20] sm:$0xff] }
  0x1c   : > { %1382 = vmatprep.mubr.msk.bf16.mxu0 %vm450_vm0, %v399_v8  ;;  %v426_v18 = vpack.c.bf16 %v412_v16, %v411_v15  ;;  %v388_v19 = vld [vmem:[%s1675_s26 + $0x28] sm:$0xff]  ;;  %v413_v20 = vld [vmem:[%s1680_s30 + $0x20] sm:$0xff]  ;;  %v389_v26 = vld [vmem:[%s1675_s26 + $0x30] sm:$0xff] }
  0x1d   : > { %v414_v21 = vld [vmem:[%s1680_s30 + $0x28] sm:$0xff]  ;;  %1402 = vmatprep.mubr.msk.bf16.mxu1 %vm639_vm1, %v425_v13  ;;  %1383 = vmatmul.mubr.msk.bf16.vlgmr.msra.gmra.mxu0 %vm450_vm0, %v400_v14  ;;  %v401_v22 = vpack.c.bf16 %v388_v19, %v387_v17  ;;  %v390_v27 = vld [vmem:[%s1675_s26 + $0x38] sm:$0xff]  ;;  %v415_v28 = vld [vmem:[%s1680_s30 + $0x30] sm:$0xff] }
  0x1e   : > { %v427_v23 = vpack.c.bf16 %v414_v21, %v413_v20  ;;  %1403 = vmatmul.mubr.msk.bf16.vlgmr.msra.gmra.mxu1 %vm639_vm1, %v426_v18  ;;  %942 = vmatpush1.bf16.msra.mxu0 %v1461_v4  ;;  %v416_v29 = vld [vmem:[%s1680_s30 + $0x38] sm:$0xff]  ;;  %v391_v30 = vld [vmem:[%s1675_s26 + $0x40] sm:$0xff]  ;;  %v392_v31 = vld [vmem:[%s1675_s26 + $0x48] sm:$0xff]  ;;  %v402_v34 = vpack.c.bf16 %v390_v27, %v389_v26 }
  0x1f   : > { %1386 = vmatprep.mubr.msk.bf16.mxu0 %vm450_vm0, %v401_v22  ;;  %v417_v32 = vld [vmem:[%s1680_s30 + $0x40] sm:$0xff]  ;;  %v418_v33 = vld [vmem:[%s1680_s30 + $0x48] sm:$0xff]  ;;  %943 = vmatprep.subr.bf16.mxu0 %v1466_v12  ;;  %v428_v35 = vpack.c.bf16 %v416_v29, %v415_v28  ;;  %v403_v36 = vpack.c.bf16 %v392_v31, %v391_v30  ;;  %v393_v39 = vld [vmem:[%s1675_s26 + $0x50] sm:$0xff] }
  0x20   : > { %1406 = vmatprep.mubr.msk.bf16.mxu1 %vm639_vm1, %v427_v23  ;;  %v429_v37 = vpack.c.bf16 %v418_v33, %v417_v32  ;;  %v394_v40 = vld [vmem:[%s1675_s26 + $0x58] sm:$0xff]  ;;  %v419_v42 = vld [vmem:[%s1680_s30 + $0x50] sm:$0xff]  ;;  %v395_v44 = vld [vmem:[%s1675_s26 + $0x60] sm:$0xff] }
  0x21   : > { %v420_v43 = vld [vmem:[%s1680_s30 + $0x58] sm:$0xff]  ;;  %v396_v45 = vld [vmem:[%s1675_s26 + $0x68] sm:$0xff]  ;;  %v421_v46 = vld [vmem:[%s1680_s30 + $0x60] sm:$0xff]  ;;  %v404_v50 = vpack.c.bf16 %v394_v40, %v393_v39 }
  0x22   : > { %944 = vmatpush1.bf16.msra.mxu0 %v1464_v24  ;;  %v422_v48 = vld [vmem:[%s1680_s30 + $0x68] sm:$0xff]  ;;  %v1475_v49 = vld [vmem:[%s1983_s6 + $0x34] ss:$8 sps:$4 sm:$0xff]   ;;  %v430_v51 = vpack.c.bf16 %v420_v43, %v419_v42  ;;  %v405_v52 = vpack.c.bf16 %v396_v45, %v395_v44  ;;  %v1473_v54 = vld [vmem:[%s1983_s6 + $0x30] ss:$8 sps:$4 sm:$0xff]  }
  0x23   : > { %945 = vmatprep.subr.bf16.mxu0 %v1469_v25  ;;  %v431_v53 = vpack.c.bf16 %v422_v48, %v421_v46  ;;  %v397_v55 = vld [vmem:[%s1675_s26 + $0x70] sm:$0xff]  ;;  %v398_v56 = vld [vmem:[%s1675_s26 + $0x78] sm:$0xff]  ;;  %v1478_v61 = vld [vmem:[%s1983_s6 + $0x24] ss:$8 sps:$4 sm:$0xff]   ;;  %s1942_s26 = scalar_lea.hbm %s1987_s10, %s1659_s28 }
  0x24   : > { %v423_v57 = vld [vmem:[%s1680_s30 + $0x70] sm:$0xff]  ;;  %v424_v58 = vld [vmem:[%s1680_s30 + $0x78] sm:$0xff]  ;;  %v406_v59 = vpack.c.bf16 %v398_v56, %v397_v55  ;;  %v1476_v62 = vld [vmem:[%s1983_s6 + $0x20] ss:$8 sps:$4 sm:$0xff]   ;;  %s1489_s30 = scalar_lea.vmem %s1246_s29, 16 }
  0x25   : > { %1387 = vmatmul.mubr.msk.bf16.gmra.mxu0 %vm450_vm0, %v402_v34  ;;  %v432_v60 = vpack.c.bf16 %v424_v58, %v423_v57  ;;  %v1481_v63 = vld [vmem:[%s1983_s6 + $0x14] ss:$8 sps:$4 sm:$0xff]   ;;  %v1479_v0 = vld [vmem:[%s1983_s6 + $0x10] ss:$8 sps:$4 sm:$0xff]   ;;  %v1484_v1 = vld [vmem:[%s1983_s6 + $0x4] ss:$8 sps:$4 sm:$0xff]   ;;  %p1490_p11 = scmp.ne.s32.totalorder %s1246_s29, %s1489_s30  ;;  %p1497_p1 = scmp.lt.s32.totalorder %s1495_s19, %s1489_s30 }
  0x26   : > { %1407 = vmatmul.mubr.msk.bf16.gmra.mxu1 %vm639_vm1, %v428_v35  ;;  %1390 = vmatprep.mubr.msk.bf16.mxu0 %vm450_vm0, %v403_v36  ;;  %v1482_v2 = vld [vmem:[%s1983_s6] ss:$8 sps:$4 sm:$0xff]  }
  0x27   : > { %1410 = vmatprep.mubr.msk.bf16.mxu1 %vm639_vm1, %v429_v37  ;;  %946 = vmatpush1.bf16.msra.mxu0 %v1467_v38  ;;  %v1779_v6 = vld [vmem:[%s1980_s3] ss:$0 sm:$0xff]  ;;  %p1491_p12 = pnand %p1490_p11, %p1646_p5  ;;  %p1498_p2 = por %p1497_p1, %p1496_p0 }
  0x28   : > { %947 = vmatprep.subr.bf16.mxu0 %v1472_v41  ;;  %v1784_v8 = vld [vmem:[%s1982_s5] ss:$0 sm:$0xff] }
  0x29   : > { %p1492_p13 = pneg %p1491_p12 }
  0x2b   : > { %948 = vmatpush1.bf16.msra.mxu0 %v1470_v47  ;;  %p1499_p3 = pnand %p1498_p2, %p1492_p13 }
  0x2c   : > { %949 = vmatprep.subr.bf16.mxu0 %v1475_v49 }
  0x2d   : > { %1391 = vmatmul.mubr.msk.bf16.gmra.mxu0 %vm450_vm0, %v404_v50 }
  0x2e   : > { %1411 = vmatmul.mubr.msk.bf16.gmra.mxu1 %vm639_vm1, %v430_v51  ;;  %1394 = vmatprep.mubr.msk.bf16.mxu0 %vm450_vm0, %v405_v52 }
  0x2f   : > { %1414 = vmatprep.mubr.msk.bf16.mxu1 %vm639_vm1, %v431_v53  ;;  %950 = vmatpush1.bf16.msra.mxu0 %v1473_v54 }
  0x30   : > { %951 = vmatprep.subr.bf16.mxu0 %v1478_v61 }
  0x33   : > { %952 = vmatpush1.bf16.msra.mxu0 %v1476_v62 }
  0x34   : > { %953 = vmatprep.subr.bf16.mxu0 %v1481_v63 }
  0x35   : > { %1395 = vmatmul.mubr.msk.bf16.gmra.mxu0 %vm450_vm0, %v406_v59 }
  0x36   : > { %1415 = vmatmul.mubr.msk.bf16.gmra.mxu1 %vm639_vm1, %v432_v60  ;;  %973 = vmatprep.mubr.bf16.mxu0 %v1551_v3 }
  0x37   : > { %954 = vmatpush1.bf16.msra.mxu0 %v1479_v0 }
  0x38   : > { %955 = vmatprep.subr.bf16.mxu0 %v1484_v1 }
  0x3b   : > { %956 = vmatpush1.bf16.msra.mxu0 %v1482_v2 }
  0xdd   : > { %v1384_v4 = vpop.f32.mrf.mxu0 }
  0xde   : > { %v1404_v5 = vpop.f32.mrf.mxu1  ;;  %v518_v17 = vadd.f32 %v1384_v4, %v1779_v6 }
  0xdf   : > { %v509_v7 = vpop.f32.mrf.mxu0  ;;  %v707_v20 = vadd.f32 %v1404_v5, %v1784_v8 }
  0xe0   : > { %v510_v9 = vadd.f32 %v1779_v6, %v509_v7  ;;  %v698_v10 = vpop.f32.mrf.mxu1  ;;  %v590_v31 = vmul.f32 0.2, %v518_v17  ;;  %vm574_vm6 = vcmp.gt.f32.partialorder %v518_v17, 0.0 }
  0xe1   : > { %v699_v11 = vadd.f32 %v1784_v8, %v698_v10  ;;  %v1385_v12 = vpop.f32.mrf.mxu0  ;;  %vm763_vm7 = vcmp.gt.f32.partialorder %v707_v20, 0.0  ;;  %v779_v34 = vmul.f32 0.2, %v707_v20 }
  0xe2   : > { %v1405_v13 = vpop.f32.mrf.mxu1  ;;  %v588_v14 = vmul.f32 0.2, %v510_v9  ;;  %vm572_vm2 = vcmp.gt.f32.partialorder %v510_v9, 0.0  ;;  %v521_v23 = vadd.f32 %v1385_v12, %v1779_v6  ;;  %v606_v43 = vsel %vm574_vm6, %v518_v17, %v590_v31 }
  0xe3   : > { %v777_v15 = vmul.f32 0.2, %v699_v11  ;;  %v512_v16 = vpop.f32.mrf.mxu0  ;;  %vm761_vm3 = vcmp.gt.f32.partialorder %v699_v11, 0.0  ;;  %v710_v24 = vadd.f32 %v1405_v13, %v1784_v8  ;;  %v795_v47 = vsel %vm763_vm7, %v707_v20, %v779_v34 }
  0xe4   : > { %v513_v18 = vadd.f32 %v1779_v6, %v512_v16  ;;  %v701_v19 = vpop.f32.mrf.mxu1  ;;  %v604_v27 = vsel %vm572_vm2, %v510_v9, %v588_v14  ;;  %v591_v38 = vmul.f32 0.2, %v521_v23  ;;  %vm575_vm8 = vcmp.gt.f32.partialorder %v521_v23, 0.0 }
  0xe5   : > { %v702_v21 = vadd.f32 %v1784_v8, %v701_v19  ;;  %v1388_v22 = vpop.f32.mrf.mxu0  ;;  %v793_v28 = vsel %vm761_vm3, %v699_v11, %v777_v15  ;;  %v780_v39 = vmul.f32 0.2, %v710_v24  ;;  %vm764_vm9 = vcmp.gt.f32.partialorder %v710_v24, 0.0 }
  0xe6   : > { %vm573_vm4 = vcmp.gt.f32.partialorder %v513_v18, 0.0  ;;  %v589_v25 = vmul.f32 0.2, %v513_v18  ;;  %v1408_v26 = vpop.f32.mrf.mxu1  ;;  %v809_v37 = vadd.f32 %v793_v28, %v604_v27  ;;  %v607_v51 = vsel %vm575_vm8, %v521_v23, %v591_v38 }
  0xe7   : > { %vm762_vm5 = vcmp.gt.f32.partialorder %v702_v21, 0.0  ;;  %v778_v29 = vmul.f32 0.2, %v702_v21  ;;  %v525_v30 = vpop.f32.mrf.mxu0  ;;  %v796_v52 = vsel %vm764_vm9, %v710_v24, %v780_v39  ;;  %v811_v56 = vadd.f32 %v795_v47, %v606_v43 }
  0xe8   : > { %v605_v32 = vsel %vm573_vm4, %v513_v18, %v589_v25  ;;  %v714_v33 = vpop.f32.mrf.mxu1  ;;  %v526_v45 = vadd.f32 %v1779_v6, %v525_v30  ;;  %v812_v60 = vadd.f32 %v796_v52, %v607_v51  ;;  %v534_v63 = vadd.f32 %v1388_v22, %v1779_v6 }
  0xe9   : > { %v794_v35 = vsel %vm762_vm5, %v702_v21, %v778_v29  ;;  %v1389_v36 = vpop.f32.mrf.mxu0  ;;  %v715_v48 = vadd.f32 %v1784_v8, %v714_v33  ;;  %v723_v0 = vadd.f32 %v1408_v26, %v1784_v8 }
  0xea   : > { %v810_v40 = vadd.f32 %v794_v35, %v605_v32  ;;  %v1409_v41 = vpop.f32.mrf.mxu1  ;;  %v592_v55 = vmul.f32 0.2, %v526_v45  ;;  %vm576_vm10 = vcmp.gt.f32.partialorder %v526_v45, 0.0  ;;  %v537_v1 = vadd.f32 %v1389_v36, %v1779_v6 }
  0xeb   : > { %v528_v42 = vpop.f32.mrf.mxu0  ;;  %v781_v57 = vmul.f32 0.2, %v715_v48  ;;  %vm765_vm11 = vcmp.gt.f32.partialorder %v715_v48, 0.0  ;;  %v726_v2 = vadd.f32 %v1409_v41, %v1784_v8  ;;  %v826_v4 = vpack.c.bf16 %v812_v60, %v811_v56 }
  0xec   : > { %v825_v44 = vpack.c.bf16 %v810_v40, %v809_v37  ;;  %v717_v46 = vpop.f32.mrf.mxu1  ;;  %v529_v49 = vadd.f32 %v1779_v6, %v528_v42  ;;  %v608_v5 = vsel %vm576_vm10, %v526_v45, %v592_v55  ;;  %vm578_vm14 = vcmp.gt.f32.partialorder %v534_v63, 0.0 }
  0xed   : > { %v718_v50 = vadd.f32 %v1784_v8, %v717_v46  ;;  %v1799_v53 = vpop.f32.mrf.mxu0  ;;  %v797_v7 = vsel %vm765_vm11, %v715_v48, %v781_v57  ;;  %v594_v13 = vmul.f32 0.2, %v534_v63  ;;  %v783_v14 = vmul.f32 0.2, %v723_v0 }
  0xee   : > { %974 = vmatmul.mubr.bf16.vlgmr.msra.gmra.mxu0 %v825_v44  ;;  %v1801_v54 = vpop.f32.mrf.mxu1  ;;  %v593_v58 = vmul.f32 0.2, %v529_v49  ;;  %vm577_vm12 = vcmp.gt.f32.partialorder %v529_v49, 0.0  ;;  %v595_v15 = vmul.f32 0.2, %v537_v1  ;;  %v813_v16 = vadd.f32 %v797_v7, %v608_v5 }
  0xef   : > { %983 = vmatprep.mubr.bf16.mxu0 %v1551_v3  ;;  %v782_v59 = vmul.f32 0.2, %v718_v50  ;;  %vm766_vm13 = vcmp.gt.f32.partialorder %v718_v50, 0.0  ;;  %v541_v61 = vpop.f32.mrf.mxu0  ;;  %vm767_vm15 = vcmp.gt.f32.partialorder %v723_v0, 0.0  ;;  %vm579_vm0 = vcmp.gt.f32.partialorder %v537_v1, 0.0 }
  0xf0   : > { %v730_v62 = vpop.f32.mrf.mxu1  ;;  %v609_v9 = vsel %vm577_vm12, %v529_v49, %v593_v58  ;;  %v784_v18 = vmul.f32 0.2, %v726_v2  ;;  %vm768_vm1 = vcmp.gt.f32.partialorder %v726_v2, 0.0  ;;  %v610_v21 = vsel %vm578_vm14, %v534_v63, %v594_v13 }
  0xf1   : > { %v798_v10 = vsel %vm766_vm13, %v718_v50, %v782_v59  ;;  %v1393_v11 = vpop.f32.mrf.mxu0  ;;  %v799_v22 = vsel %vm767_vm15, %v723_v0, %v783_v14  ;;  %v611_v23 = vsel %vm579_vm0, %v537_v1, %v595_v15  ;;  %v542_v24 = vadd.f32 %v1779_v6, %v541_v61 }
  0xf2   : > { %v1413_v12 = vpop.f32.mrf.mxu1  ;;  %v814_v17 = vadd.f32 %v798_v10, %v609_v9  ;;  %v800_v26 = vsel %vm768_vm1, %v726_v2, %v784_v18  ;;  %v731_v27 = vadd.f32 %v1784_v8, %v730_v62  ;;  %v815_v33 = vadd.f32 %v799_v22, %v610_v21 }
  0xf3   : > { %v544_v19 = vpop.f32.mrf.mxu0  ;;  %v596_v32 = vmul.f32 0.2, %v542_v24  ;;  %v816_v34 = vadd.f32 %v800_v26, %v611_v23  ;;  %vm580_vm2 = vcmp.gt.f32.partialorder %v542_v24, 0.0  ;;  %v550_v40 = vadd.f32 %v1799_v53, %v1779_v6 }
  0xf4   : > { %v733_v20 = vpop.f32.mrf.mxu1  ;;  %v827_v25 = vpack.c.bf16 %v814_v17, %v813_v16  ;;  %v545_v28 = vadd.f32 %v1779_v6, %v544_v19  ;;  %v785_v35 = vmul.f32 0.2, %v731_v27  ;;  %vm769_vm3 = vcmp.gt.f32.partialorder %v731_v27, 0.0 }
  0xf5   : > { %v734_v29 = vadd.f32 %v1784_v8, %v733_v20  ;;  %v1396_v30 = vpop.f32.mrf.mxu0  ;;  %v739_v41 = vadd.f32 %v1801_v54, %v1784_v8  ;;  %v553_v42 = vadd.f32 %v1393_v11, %v1779_v6  ;;  %v742_v43 = vadd.f32 %v1413_v12, %v1784_v8 }
  0xf6   : > { %984 = vmatmul.mubr.bf16.gmra.mxu0 %v826_v4  ;;  %v1416_v31 = vpop.f32.mrf.mxu1  ;;  %v597_v36 = vmul.f32 0.2, %v545_v28  ;;  %vm581_vm4 = vcmp.gt.f32.partialorder %v545_v28, 0.0  ;;  %v828_v44 = vpack.c.bf16 %v816_v34, %v815_v33  ;;  %v612_v45 = vsel %vm580_vm2, %v542_v24, %v596_v32 }
  0xf7   : > { %993 = vmatprep.mubr.bf16.mxu0 %v1551_v3  ;;  %v786_v37 = vmul.f32 0.2, %v734_v29  ;;  %vm770_vm5 = vcmp.gt.f32.partialorder %v734_v29, 0.0  ;;  %v557_v38 = vpop.f32.mrf.mxu0  ;;  %v801_v46 = vsel %vm769_vm3, %v731_v27, %v785_v35  ;;  %vm582_vm6 = vcmp.gt.f32.partialorder %v550_v40, 0.0  ;;  %v1151_v35 = vld [vmem:[%s1985_s8 + $0x8] sm:$0xff] }
  0xf8   : > { %v746_v39 = vpop.f32.mrf.mxu1  ;;  %v613_v47 = vsel %vm581_vm4, %v545_v28, %v597_v36  ;;  %v598_v51 = vmul.f32 0.2, %v550_v40  ;;  %v787_v52 = vmul.f32 0.2, %v739_v41  ;;  %v599_v53 = vmul.f32 0.2, %v553_v42  ;;  %1216 = vmatprep.mubr.f32.mxu1 %v1151_v35 }
  0xf9   : > { %v802_v48 = vsel %vm770_vm5, %v734_v29, %v786_v37  ;;  %v1397_v49 = vpop.f32.mrf.mxu0  ;;  %v817_v55 = vadd.f32 %v801_v46, %v612_v45  ;;  %vm771_vm7 = vcmp.gt.f32.partialorder %v739_v41, 0.0  ;;  %vm583_vm8 = vcmp.gt.f32.partialorder %v553_v42, 0.0 }
  0xfa   : > { %v1417_v50 = vpop.f32.mrf.mxu1  ;;  %v818_v54 = vadd.f32 %v802_v48, %v613_v47  ;;  %v788_v56 = vmul.f32 0.2, %v742_v43  ;;  %vm772_vm9 = vcmp.gt.f32.partialorder %v742_v43, 0.0  ;;  %v614_v59 = vsel %vm582_vm6, %v550_v40, %v598_v51 }
  0xfb   : > { %v560_v57 = vpop.f32.mrf.mxu0  ;;  %v803_v60 = vsel %vm771_vm7, %v739_v41, %v787_v52  ;;  %v615_v61 = vsel %vm583_vm8, %v553_v42, %v599_v53  ;;  %v558_v62 = vadd.f32 %v1779_v6, %v557_v38  ;;  %v747_v1 = vadd.f32 %v1784_v8, %v746_v39 }
  0xfc   : > { %v749_v58 = vpop.f32.mrf.mxu1  ;;  %v829_v63 = vpack.c.bf16 %v818_v54, %v817_v55  ;;  %v804_v0 = vsel %vm772_vm9, %v742_v43, %v788_v56  ;;  %v561_v2 = vadd.f32 %v1779_v6, %v560_v57  ;;  %v819_v7 = vadd.f32 %v803_v60, %v614_v59 }
  0xfd   : > { %v750_v4 = vadd.f32 %v1784_v8, %v749_v58  ;;  %v600_v5 = vmul.f32 0.2, %v558_v62  ;;  %v820_v9 = vadd.f32 %v804_v0, %v615_v61  ;;  %v789_v10 = vmul.f32 0.2, %v747_v1 }
  0xfe   : > { %994 = vmatmul.mubr.bf16.gmra.mxu0 %v827_v25  ;;  %v601_v11 = vmul.f32 0.2, %v561_v2  ;;  %vm584_vm10 = vcmp.gt.f32.partialorder %v558_v62, 0.0  ;;  %vm773_vm11 = vcmp.gt.f32.partialorder %v747_v1, 0.0  ;;  %vm585_vm12 = vcmp.gt.f32.partialorder %v561_v2, 0.0 }
  0xff   : > { %1003 = vmatprep.mubr.bf16.mxu0 %v1551_v3  ;;  %v790_v12 = vmul.f32 0.2, %v750_v4  ;;  %vm774_vm13 = vcmp.gt.f32.partialorder %v750_v4, 0.0  ;;  %v566_v13 = vadd.f32 %v1396_v30, %v1779_v6  ;;  %v755_v14 = vadd.f32 %v1416_v31, %v1784_v8 }
 0x100   : > { %v569_v15 = vadd.f32 %v1397_v49, %v1779_v6  ;;  %v758_v16 = vadd.f32 %v1417_v50, %v1784_v8  ;;  %v830_v17 = vpack.c.bf16 %v820_v9, %v819_v7  ;;  %v616_v18 = vsel %vm584_vm10, %v558_v62, %v600_v5 }
 0x101   : > { %v805_v19 = vsel %vm773_vm11, %v747_v1, %v789_v10  ;;  %v617_v20 = vsel %vm585_vm12, %v561_v2, %v601_v11  ;;  %v806_v21 = vsel %vm774_vm13, %v750_v4, %v790_v12  ;;  %v602_v22 = vmul.f32 0.2, %v566_v13  ;;  %v849_v2 = vld [vmem:[%s1984_s7] sm:$0x3] }
 0x102   : > { %v821_v23 = vadd.f32 %v805_v19, %v616_v18  ;;  %v822_v24 = vadd.f32 %v806_v21, %v617_v20  ;;  %v791_v25 = vmul.f32 0.2, %v755_v14  ;;  %v603_v26 = vmul.f32 0.2, %v569_v15 }
 0x103   : > { %v792_v27 = vmul.f32 0.2, %v758_v16  ;;  %vm586_vm14 = vcmp.gt.f32.partialorder %v566_v13, 0.0  ;;  %vm775_vm15 = vcmp.gt.f32.partialorder %v755_v14, 0.0  ;;  %vm587_vm0 = vcmp.gt.f32.partialorder %v569_v15, 0.0 }
 0x104   : > { %vm776_vm1 = vcmp.gt.f32.partialorder %v758_v16, 0.0  ;;  %v831_v6 = vpack.c.bf16 %v822_v24, %v821_v23  ;;  %v618_v8 = vsel %vm586_vm14, %v566_v13, %v602_v22  ;;  %v807_v28 = vsel %vm775_vm15, %v755_v14, %v791_v25 }
 0x105   : > { %v619_v29 = vsel %vm587_vm0, %v569_v15, %v603_v26  ;;  %v808_v30 = vsel %vm776_vm1, %v758_v16, %v792_v27  ;;  %v823_v31 = vadd.f32 %v807_v28, %v618_v8  ;;  %v851_v58 = vlaneseq }
 0x106   : > { %1004 = vmatmul.mubr.bf16.gmra.mxu0 %v828_v44  ;;  %v824_v32 = vadd.f32 %v808_v30, %v619_v29 }
 0x107   : > { %1013 = vmatprep.mubr.bf16.mxu0 %v1551_v3  ;;  %v852_v61 = vshrl.u32 %v851_v58, 7 }
 0x108   : > { %v832_v33 = vpack.c.bf16 %v824_v32, %v823_v31 }
 0x109   : > { %v853_v0 = vsub.s32 0, %v852_v61  ;;  %v857_v1 = vsub.s32 1, %v852_v61 }
 0x10b   : > { %v1878_v7 = vrot.slane %v849_v2, %v853_v0  ;;  %v1880_v9 = vrot.slane %v849_v2, %v857_v1 }
 0x10e   : > { %1014 = vmatmul.mubr.bf16.gmra.mxu0 %v829_v63 }
 0x10f   : > { %1023 = vmatprep.mubr.bf16.mxu0 %v1551_v3 }
 0x116   : > { %1024 = vmatmul.mubr.bf16.gmra.mxu0 %v830_v17 }
 0x117   : > { %1033 = vmatprep.mubr.bf16.mxu0 %v1551_v3 }
 0x11e   : > { %1034 = vmatmul.mubr.bf16.gmra.mxu0 %v831_v6 }
 0x11f   : > { %1043 = vmatprep.mubr.bf16.mxu0 %v1551_v3 }
 0x126   : > { %1044 = vmatmul.mubr.bf16.gmra.mxu0 %v832_v33 }
 0x1ae   : > { %v1832_v34 = vpop.f32.mrf.mxu0 }
 0x1b0   : > { %v1837_v36 = vpop.f32.mrf.mxu0 }
 0x1b2   : > { %v1839_v37 = vpop.f32.mrf.mxu0 }
 0x1b4   : > { %v1841_v38 = vpop.f32.mrf.mxu0 }
 0x1b6   : > { %v1843_v39 = vpop.f32.mrf.mxu0 }
 0x1b8   : > { %v1845_v3 = vpop.f32.mrf.mxu0 }
 0x1ba   : > { %v1847_v40 = vpop.f32.mrf.mxu0 }
 0x1bc   : > { %v1849_v41 = vpop.f32.mrf.mxu0 }
 0x1be   : > { %v1851_v42 = vpop.f32.mrf.mxu0 }
 0x1c0   : > { %v1853_v43 = vpop.f32.mrf.mxu0 }
 0x1c2   : > { %v1855_v44 = vpop.f32.mrf.mxu0 }
 0x1c4   : > { %v1857_v45 = vpop.f32.mrf.mxu0 }
 0x1c6   : > { %v1859_v46 = vpop.f32.mrf.mxu0 }
 0x1c8   : > { %v1861_v47 = vpop.f32.mrf.mxu0 }
 0x1ca   : > { %v1863_v48 = vpop.f32.mrf.mxu0 }
 0x1cc   : > { %v1865_v49 = vpop.f32.mrf.mxu0 }
 0x1ce   : > { %v1867_v50 = vpop.f32.mrf.mxu0 }
 0x1d0   : > { %v1869_v51 = vpop.f32.mrf.mxu0 }
 0x1d1   : > { %v1018_v2 = vadd.f32 %v1869_v51, %v1880_v9  ;;  %v1010_v51 = vadd.f32 %v1863_v48, %v1878_v7 }
 0x1d2   : > { %v1871_v52 = vpop.f32.mrf.mxu0 }
 0x1d3   : > { %vm1071_vm0 = vcmp.gt.f32.partialorder %v1018_v2, 0.0 }
 0x1d4   : > { %v1873_v53 = vpop.f32.mrf.mxu0 }
 0x1d6   : > { %v1025_v55 = vpop.f32.mrf.mxu0 }
 0x1d8   : > { %v1027_v54 = vpop.f32.mrf.mxu0 }
 0x1d9   : > { %v1028_v35 = vadd.f32 %v1027_v54, %v1880_v9  ;;  %v1020_v54 = vadd.f32 %v1871_v52, %v1878_v7  ;;  %v1103_v52 = vmul.f32 0.2, %v1018_v2 }
 0x1da   : > { %v1029_v56 = vpop.f32.mrf.mxu0 }
 0x1db   : > { %v1030_v31 = vadd.f32 %v1029_v56, %v1878_v7  ;;  %vm1075_vm12 = vcmp.gt.f32.partialorder %v1028_v35, 0.0  ;;  %vm1072_vm15 = vcmp.gt.f32.partialorder %v1020_v54, 0.0 }
 0x1dc   : > { %v1031_v57 = vpop.f32.mrf.mxu0 }
 0x1dd   : > { %v1032_v28 = vadd.f32 %v1031_v57, %v1880_v9  ;;  %v1026_v57 = vadd.f32 %v1025_v55, %v1878_v7  ;;  %vm1076_vm11 = vcmp.gt.f32.partialorder %v1030_v31, 0.0 }
 0x1de   : > { %v1035_v59 = vpop.f32.mrf.mxu0 }
 0x1df   : > { %v1036_v27 = vadd.f32 %v1035_v59, %v1878_v7  ;;  %v1109_v58 = vmul.f32 0.2, %v1032_v28  ;;  %vm1077_vm10 = vcmp.gt.f32.partialorder %v1032_v28, 0.0  ;;  %v1106_v0 = vmul.f32 0.2, %v1026_v57 }
 0x1e0   : > { %v1037_v60 = vpop.f32.mrf.mxu0  ;;  %vm1074_vm13 = vcmp.gt.f32.partialorder %v1026_v57, 0.0 }
 0x1e1   : > { %v1038_v24 = vadd.f32 %v1037_v60, %v1880_v9  ;;  %v1110_v32 = vmul.f32 0.2, %v1036_v27  ;;  %vm1078_vm9 = vcmp.gt.f32.partialorder %v1036_v27, 0.0  ;;  %v1108_v60 = vmul.f32 0.2, %v1030_v31 }
 0x1e2   : > { %v1039_v62 = vpop.f32.mrf.mxu0  ;;  %v1141_v56 = vsel %vm1077_vm10, %v1032_v28, %v1109_v58 }
 0x1e3   : > { %v1040_v21 = vadd.f32 %v1039_v62, %v1878_v7  ;;  %v1111_v29 = vmul.f32 0.2, %v1038_v24  ;;  %vm1079_vm8 = vcmp.gt.f32.partialorder %v1038_v24, 0.0  ;;  %v1142_v61 = vsel %vm1078_vm9, %v1036_v27, %v1110_v32 }
 0x1e4   : > { %v1041_v63 = vpop.f32.mrf.mxu0  ;;  %v1022_v62 = vadd.f32 %v1873_v53, %v1880_v9  ;;  %v1140_v1 = vsel %vm1076_vm11, %v1030_v31, %v1108_v60  ;;  %v1016_v53 = vadd.f32 %v1867_v50, %v1878_v7  ;;  %v992_v27 = vadd.f32 %v1849_v41, %v1880_v9 }
 0x1e5   : > { %v1042_v15 = vadd.f32 %v1041_v63, %v1880_v9  ;;  %v1112_v6 = vmul.f32 0.2, %v1040_v21  ;;  %vm1080_vm7 = vcmp.gt.f32.partialorder %v1040_v21, 0.0  ;;  %v1143_v59 = vsel %vm1079_vm8, %v1038_v24, %v1111_v29 }
 0x1e6   : > { %v1045_v4 = vpop.f32.mrf.mxu0  ;;  %v1107_v63 = vmul.f32 0.2, %v1028_v35  ;;  %v1105_v55 = vmul.f32 0.2, %v1022_v62  ;;  %vm1073_vm14 = vcmp.gt.f32.partialorder %v1022_v62, 0.0  ;;  %vm1070_vm1 = vcmp.gt.f32.partialorder %v1016_v53, 0.0 }
 0x1e7   : > { %v1046_v16 = vadd.f32 %v1045_v4, %v1878_v7  ;;  %v1113_v25 = vmul.f32 0.2, %v1042_v15  ;;  %vm1081_vm6 = vcmp.gt.f32.partialorder %v1042_v15, 0.0  ;;  %v1144_v33 = vsel %vm1080_vm7, %v1040_v21, %v1112_v6 }
 0x1e8   : > { %v1047_v5 = vpop.f32.mrf.mxu0  ;;  %v1139_v4 = vsel %vm1075_vm12, %v1028_v35, %v1107_v63  ;;  %v988_v29 = vadd.f32 %v1845_v3, %v1880_v9  ;;  %vm1061_vm10 = vcmp.gt.f32.partialorder %v992_v27, 0.0  ;;  %v986_v41 = vadd.f32 %v1843_v39, %v1878_v7 }
 0x1e9   : > { %v1048_v11 = vadd.f32 %v1047_v5, %v1880_v9  ;;  %v1114_v22 = vmul.f32 0.2, %v1046_v16  ;;  %vm1082_vm5 = vcmp.gt.f32.partialorder %v1046_v16, 0.0  ;;  %v1145_v30 = vsel %vm1081_vm6, %v1042_v15, %v1113_v25 }
 0x1ea   : > { %v1049_v10 = vpop.f32.mrf.mxu0  ;;  %v1104_v5 = vmul.f32 0.2, %v1020_v54  ;;  %v1008_v15 = vadd.f32 %v1861_v47, %v1880_v9  ;;  %v1000_v47 = vadd.f32 %v1855_v44, %v1878_v7  ;;  %vm1059_vm12 = vcmp.gt.f32.partialorder %v988_v29, 0.0 }
 0x1eb   : > { %v1050_v12 = vadd.f32 %v1049_v10, %v1878_v7  ;;  %v1115_v18 = vmul.f32 0.2, %v1048_v11  ;;  %vm1083_vm4 = vcmp.gt.f32.partialorder %v1048_v11, 0.0  ;;  %v1146_v8 = vsel %vm1082_vm5, %v1046_v16, %v1114_v22 }
 0x1ec   : > { %v1051_v13 = vpop.f32.mrf.mxu0  ;;  %v1138_v10 = vsel %vm1074_vm13, %v1026_v57, %v1106_v0  ;;  %v1135_v16 = vsel %vm1071_vm0, %v1018_v2, %v1103_v52  ;;  %v1099_v48 = vmul.f32 0.2, %v1008_v15  ;;  %v1096_v25 = vmul.f32 0.2, %v1000_v47 }
 0x1ed   : > { %v1052_v14 = vadd.f32 %v1051_v13, %v1880_v9  ;;  %v1116_v17 = vmul.f32 0.2, %v1050_v12  ;;  %vm1084_vm2 = vcmp.gt.f32.partialorder %v1050_v12, 0.0  ;;  %v1147_v26 = vsel %vm1083_vm4, %v1048_v11, %v1115_v18 }
 0x1ee   : > { %v1012_v11 = vadd.f32 %v1865_v49, %v1880_v9  ;;  %v1102_v13 = vmul.f32 0.2, %v1016_v53  ;;  %v1006_v49 = vadd.f32 %v1859_v46, %v1878_v7  ;;  %vm1067_vm4 = vcmp.gt.f32.partialorder %v1008_v15, 0.0 }
 0x1ef   : > { %v1117_v19 = vmul.f32 0.2, %v1052_v14  ;;  %vm1085_vm3 = vcmp.gt.f32.partialorder %v1052_v14, 0.0  ;;  %v1148_v23 = vsel %vm1084_vm2, %v1050_v12, %v1116_v17  ;;  %v1137_v12 = vsel %vm1073_vm14, %v1022_v62, %v1105_v55 }
 0x1f0   : > { %v1101_v50 = vmul.f32 0.2, %v1012_v11  ;;  %vm1069_vm2 = vcmp.gt.f32.partialorder %v1012_v11, 0.0  ;;  %v1100_v17 = vmul.f32 0.2, %v1010_v51  ;;  %v1134_v18 = vsel %vm1070_vm1, %v1016_v53, %v1102_v13 }
 0x1f1   : > { %v1149_v20 = vsel %vm1085_vm3, %v1052_v14, %v1117_v19  ;;  %v1136_v14 = vsel %vm1072_vm15, %v1020_v54, %v1104_v5  ;;  %v1002_v19 = vadd.f32 %v1857_v45, %v1880_v9  ;;  %vm1068_vm3 = vcmp.gt.f32.partialorder %v1010_v51, 0.0 }
 0x1f2   : > { %1152 = vmatprep.subr.mxu1 %v1149_v20  ;;  %v1133_v20 = vsel %vm1069_vm2, %v1012_v11, %v1101_v50  ;;  %v1098_v21 = vmul.f32 0.2, %v1006_v49  ;;  %v1132_v22 = vsel %vm1068_vm3, %v1010_v51, %v1100_v17  ;;  %vm1066_vm5 = vcmp.gt.f32.partialorder %v1006_v49, 0.0 }
 0x1f3   : > { %1153 = vmatpush1.xpose.msra.mxu1 %v1148_v23  ;;  %v998_v23 = vadd.f32 %v1853_v43, %v1880_v9  ;;  %v1097_v46 = vmul.f32 0.2, %v1002_v19  ;;  %v1131_v24 = vsel %vm1067_vm4, %v1008_v15, %v1099_v48  ;;  %vm1065_vm6 = vcmp.gt.f32.partialorder %v1002_v19, 0.0 }
 0x1f4   : > { %1154 = vmatprep.subr.mxu1 %v1147_v26  ;;  %v996_v45 = vadd.f32 %v1851_v42, %v1878_v7  ;;  %v1130_v26 = vsel %vm1066_vm5, %v1006_v49, %v1098_v21  ;;  %vm1064_vm7 = vcmp.gt.f32.partialorder %v1000_v47, 0.0  ;;  %v990_v43 = vadd.f32 %v1847_v40, %v1878_v7 }
 0x1f5   : > { %v1095_v44 = vmul.f32 0.2, %v998_v23  ;;  %v1129_v6 = vsel %vm1065_vm6, %v1002_v19, %v1097_v46  ;;  %vm1063_vm8 = vcmp.gt.f32.partialorder %v998_v23, 0.0  ;;  %v1128_v28 = vsel %vm1064_vm7, %v1000_v47, %v1096_v25 }
 0x1f6   : > { %v1093_v42 = vmul.f32 0.2, %v992_v27  ;;  %vm1062_vm9 = vcmp.gt.f32.partialorder %v996_v45, 0.0  ;;  %v1092_v31 = vmul.f32 0.2, %v990_v43  ;;  %vm1060_vm11 = vcmp.gt.f32.partialorder %v990_v43, 0.0 }
 0x1f7   : > { %1155 = vmatpush1.xpose.msra.mxu1 %v1146_v8  ;;  %v1094_v8 = vmul.f32 0.2, %v996_v45  ;;  %v1091_v40 = vmul.f32 0.2, %v988_v29  ;;  %v980_v3 = vadd.f32 %v1839_v37, %v1878_v7  ;;  %v1090_v58 = vmul.f32 0.2, %v986_v41 }
 0x1f8   : > { %1156 = vmatprep.subr.mxu1 %v1145_v30  ;;  %v1127_v30 = vsel %vm1063_vm8, %v998_v23, %v1095_v44  ;;  %v1125_v35 = vsel %vm1061_vm10, %v992_v27, %v1093_v42  ;;  %v978_v57 = vadd.f32 %v1837_v36, %v1880_v9  ;;  %vm1058_vm13 = vcmp.gt.f32.partialorder %v986_v41, 0.0 }
 0x1f9   : > { %v1126_v32 = vsel %vm1062_vm9, %v996_v45, %v1094_v8  ;;  %v1123_v60 = vsel %vm1059_vm12, %v988_v29, %v1091_v40  ;;  %v1122_v62 = vsel %vm1058_vm13, %v986_v41, %v1090_v58  ;;  %vm1056_vm15 = vcmp.gt.f32.partialorder %v980_v3, 0.0 }
 0x1fa   : > { %v1087_v63 = vmul.f32 0.2, %v978_v57  ;;  %vm1055_vm0 = vcmp.gt.f32.partialorder %v978_v57, 0.0 }
 0x1fb   : > { %1157 = vmatpush1.xpose.msra.mxu1 %v1144_v33  ;;  %v982_v33 = vadd.f32 %v1841_v38, %v1880_v9  ;;  %v976_v38 = vadd.f32 %v1832_v34, %v1878_v7  ;;  %v1150_v34 = vld [vmem:[%s1985_s8] sm:$0xff]  ;;  %v1223_v7 = vstv %s1222_s21 }
 0x1fc   : > { %1158 = vmatprep.subr.mxu1 %v1143_v59  ;;  %v1124_v59 = vsel %vm1060_vm11, %v990_v43, %v1092_v31  ;;  %v1119_v36 = vsel %vm1055_vm0, %v978_v57, %v1087_v63 }
 0x1fd   : > { %v1089_v39 = vmul.f32 0.2, %v982_v33  ;;  %vm1057_vm14 = vcmp.gt.f32.partialorder %v982_v33, 0.0  ;;  %vm1054_vm1 = vcmp.gt.f32.partialorder %v976_v38, 0.0 }
 0x1ff   : > { %1159 = vmatpush1.xpose.msra.mxu1 %v1142_v61  ;;  %v1088_v61 = vmul.f32 0.2, %v980_v3  ;;  %v1121_v37 = vsel %vm1057_vm14, %v982_v33, %v1089_v39 }
 0x200   : > { %1160 = vmatprep.subr.mxu1 %v1141_v56  ;;  %v1086_v56 = vmul.f32 0.2, %v976_v38 }
 0x201   : > { %v1120_v54 = vsel %vm1056_vm15, %v980_v3, %v1088_v61 }
 0x202   : > { %v1118_v9 = vsel %vm1054_vm1, %v976_v38, %v1086_v56 }
 0x203   : > { %1161 = vmatpush1.xpose.msra.mxu1 %v1140_v1 }
 0x204   : > { %1162 = vmatprep.subr.mxu1 %v1139_v4 }
 0x207   : > { %1163 = vmatpush1.xpose.msra.mxu1 %v1138_v10 }
 0x208   : > { %1164 = vmatprep.subr.mxu1 %v1137_v12 }
 0x20b   : > { %1165 = vmatpush1.xpose.msra.mxu1 %v1136_v14 }
 0x20c   : > { %1166 = vmatprep.subr.mxu1 %v1135_v16 }
 0x20f   : > { %1167 = vmatpush1.xpose.msra.mxu1 %v1134_v18 }
 0x210   : > { %1168 = vmatprep.subr.mxu1 %v1133_v20 }
 0x213   : > { %1169 = vmatpush1.xpose.msra.mxu1 %v1132_v22 }
 0x214   : > { %1170 = vmatprep.subr.mxu1 %v1131_v24 }
 0x217   : > { %1171 = vmatpush1.xpose.msra.mxu1 %v1130_v26 }
 0x218   : > { %1172 = vmatprep.subr.mxu1 %v1129_v6 }
 0x21b   : > { %1173 = vmatpush1.xpose.msra.mxu1 %v1128_v28 }
 0x21c   : > { %1174 = vmatprep.subr.mxu1 %v1127_v30 }
 0x21f   : > { %1175 = vmatpush1.xpose.msra.mxu1 %v1126_v32 }
 0x220   : > { %1176 = vmatprep.subr.mxu1 %v1125_v35 }
 0x223   : > { %1177 = vmatpush1.xpose.msra.mxu1 %v1124_v59 }
 0x224   : > { %1178 = vmatprep.subr.mxu1 %v1123_v60 }
 0x227   : > { %1179 = vmatpush1.xpose.msra.mxu1 %v1122_v62 }
 0x228   : > { %1180 = vmatprep.subr.mxu1 %v1121_v37 }
 0x22b   : > { %1181 = vmatpush1.xpose.msra.mxu1 %v1120_v54 }
 0x22c   : > { %1182 = vmatprep.subr.mxu1 %v1119_v36 }
 0x22f   : > { %1183 = vmatpush1.xpose.msra.mxu1 %v1118_v9 }
 0x232   : > { %1217 = vmatmul.mubr.f32.vlgmr.msra.gmra.mxu1 %v1150_v34 }
 0x2f2   : > { %v1218_v0 = vpop.f32.mrf.mxu1 }
 0x2f3   : > { %v1224_v1 = vadd.f32 %v1223_v7, %v1218_v0 }
 0x2f4   : > { %v1220_v2 = vpop.f32.mrf.mxu1 }
 0x2f5   : > { %v1357_v55 = vmul.f32 -1.442695, %v1224_v1 }
 0x2f7   : > { %1485 = vpow2.f32 %v1357_v55 }
 0x304   : > { %v1486_v4 = vpop.eup %1485 }
 0x305   : > { %v1228_v53 = vadd.f32 1.0, %v1486_v4 }
 0x307   : > { %1487 = vrcp.f32 %v1228_v53 }
 0x314   : > { %v1488_v5 = vpop.eup %1487 }
 0x315   : > { %1231 = vst [vmem:[%s369_s27] sm:$0x1] %v1488_v5 }
 0x316   : > { %1502 = shalt.err (!%p1499_p3)
}
 0x317   : > { %s1503_s28 = scalar_lea.hbm %s1942_s26, 16  ;;  %s1507_s27 = scalar_lea.hbm %s1987_s10, 32 }
 0x318   : > { %p1504_p4 = scmp.ne.s32.totalorder %s1942_s26, %s1503_s28  ;;  %p1508_p9 = scmp.lt.s32.totalorder %s1942_s26, %s1987_s10 }
 0x319   : > { %p1509_p10 = scmp.lt.s32.totalorder %s1507_s27, %s1503_s28 }
 0x31a   : > { %p1505_p7 = pnand %p1504_p4, %p1646_p5 }
 0x31b   : > { %p1510_p11 = por %p1509_p10, %p1508_p9 }
 0x31c   : > { %p1506_p8 = pneg %p1505_p7 }
 0x31e   : > { %p1511_p12 = pnand %p1510_p11, %p1506_p8 }
 0x320   : > { %1514 = shalt.err (!%p1511_p12)
}
 0x321   : > { %1418 = dma.vmem_to_hbm [thread:$0]  (%p1646_p5), %s1246_s29, 16, %s1942_s26, %s1233_s13  }
 0x322 PF: > { %p1424_p13 = scmp.ge.s32.totalorder %s1549_s18, 2  ;;  %s1257_s30 = sand.u32 1, %s1537_s15  }
 0x323   : > { %s1258_s14 = scalar_lea.sflag [#allocation4], %s1257_s30 }
 0x324   : > { %p1421_p0 = pnand %p1424_p13, %p1650_p6 }
 0x326   : > { %p1422_p1 = pneg %p1421_p0 }
 0x328   : > { %1532 = dma.done.wait (%p1422_p1), %s1258_s14, 16  }
 0x329   : > { %1534 = vsyncadd (%p1422_p1), %s1258_s14, 4294967280  ;;  %p21_p2 = scmp.ge.s32.totalorder %s1634_s20, 4   ;;  %s1990_s15 = smov %s1541_s16 }
 0x32a   : > { %s1991_s16 = smov %s1545_s17  ;;  %s1992_s17 = smov %s1644_s23 }
 0x32b   : > { %s1993_s18 = smov %s1634_s20  ;;  %23 = sbr.rel (!%p21_p2) target bundleno = 5 (0x5), region = 98 }
 0x330   :  { %1262 = vsyncpa [#allocation4], 1 }
 0x331   :  { %1264 = vsyncpa [#allocation4 + $0x1], 1 }

</bundles_post_ra>
